<compile_context>
chip_gen: v6e
topology: v6e:2x2x1
jax: 0.10.0
libtpu: 0.0.40
codegen_flags: <defaults>
</compile_context>

<pallas_src>
import functools
import math

import jax
import jax.numpy as jnp
from jax import lax
from jax.experimental import pallas as pl
from jax.experimental.pallas import tpu as pltpu

_VMEM_LIMIT = 32 * 1024 * 1024   # safe default on v5e/v6e (128 MiB) and v7x (64 MiB)
_NEG_MASK = -3.0e4               # additive self-similarity mask (exp underflows to 0)


def _l2norm_kernel(x_ref, o_ref, *, scale):
    """Row-wise L2 normalize one (T, C) tile, folding sqrt(1/temper) into it.

    (e*s) @ (e*s)^T = s^2 * cos = cos / temper, so the temperature multiply is
    removed from the hot (T, T) inner loop for free (rides the rsqrt multiply).
    """
    x = x_ref[...].astype(jnp.float32)
    ssq = jnp.sum(x * x, axis=1, keepdims=True)
    # F.normalize(x, dim=1): x / max(||x||, 1e-12)  ==  x * rsqrt(max(ssq, 1e-24))
    inv = lax.rsqrt(jnp.maximum(ssq, jnp.float32(1e-24))) * jnp.float32(scale)
    o_ref[...] = (x * inv).astype(o_ref.dtype)


def _infonce_tile_kernel(rows_ref, cols_ref, out_ref,
                         l_sc, lbl_sc, cnt_sc,
                         *, nt, tf, margin):
    """One (T, T) tile of the (2N, 2N) scaled-similarity matrix.

    Grid: (row_tile ri, col_step cj). The column block actually loaded is
    (ri + nt + cj) % (2*nt), so:
      cj == 0   -> positive-pair ("label") tile; its diagonal holds the label
                   logits (margin*tf applied additively here).
      cj == nt  -> self-similarity tile; diagonal pushed to ~-3e4.
    Fixed-shift softmax (shift = tf, valid since |cos| <= ~1) and the
    '# logits > label_logit' rank count accumulate across cj in scratch.
    """
    T = rows_ref.shape[0]
    cj = pl.program_id(1)
    ct = pl.num_programs(1)

    # (T, C) bf16 x (T, C) bf16 contracted on C -> (T, T) f32 (MXU, f32 acc).
    logits = lax.dot_general(
        rows_ref[...], cols_ref[...],
        dimension_numbers=(((1,), (1,)), ((), ())),
        preferred_element_type=jnp.float32)

    li = lax.broadcasted_iota(jnp.int32, (T, T), 0)
    lj = lax.broadcasted_iota(jnp.int32, (T, T), 1)
    diag = li == lj

    # Single additive diagonal fixup (temperature already folded into operands):
    #   cj == 0  -> label tile: subtract margin * tf
    #   cj == nt -> self tile : add ~-3e4 (effectively -inf after exp; also way
    #               below any label logit, so the rank count is unaffected)
    delta = jnp.where(cj == 0, jnp.float32(-margin * tf),
                      jnp.where(cj == nt, jnp.float32(_NEG_MASK), jnp.float32(0.0)))
    logits = jnp.where(diag, logits + delta, logits)

    @pl.when(cj == 0)
    def _():
        l_sc[...] = jnp.zeros_like(l_sc)
        cnt_sc[...] = jnp.zeros_like(cnt_sc)
        # label logit = diagonal of the label tile (margin already applied);
        # sourced from the same matmul values used in the '>' comparison below.
        lbl_sc[...] = jnp.sum(jnp.where(diag, logits, 0.0), axis=1, keepdims=True)

    lbl = lbl_sc[...]
    # Fixed-shift softmax: logits <= ~tf (cosines bounded by 1; bf16 rounding
    # may push a hair above -> p <= ~1.01, no overflow; masked entries -> 0).
    p = jnp.exp(logits - jnp.float32(tf))
    l_sc[...] = l_sc[...] + jnp.sum(p, axis=1, keepdims=True)
    # rank accumulation: # of logits strictly greater than the label logit
    cnt_sc[...] = cnt_sc[...] + jnp.sum((logits > lbl).astype(jnp.float32),
                                        axis=1, keepdims=True)

    @pl.when(cj == ct - 1)
    def _():
        lse = jnp.float32(tf) + jnp.log(l_sc[...])      # (T, 1)
        loss_sum = jnp.sum(lse - lbl_sc[...])           # scalar: sum of row CE
        rank = cnt_sc[...]
        c1 = jnp.sum((rank < 1.0).astype(jnp.float32))  # top-1 correct count
        c5 = jnp.sum((rank < 5.0).astype(jnp.float32))  # top-5 correct count
        # lane-dense (8, 128) partial block: [loss_sum, top1_cnt, top5_cnt, 0...]
        r8 = lax.broadcasted_iota(jnp.int32, (8, 128), 0)
        c128 = lax.broadcasted_iota(jnp.int32, (8, 128), 1)
        blk = jnp.where((r8 == 0) & (c128 == 0), loss_sum,
              jnp.where((r8 == 0) & (c128 == 1), c1,
              jnp.where((r8 == 0) & (c128 == 2), c5, jnp.float32(0.0))))
        out_ref[...] = blk


def _pick_tile(n):
    # Square logits tile; must divide N so the label/self tiles stay
    # diagonal-aligned.  Prefer >= 4 row tiles so v7x's two TensorCores stay
    # load-balanced (no-op on single-TC v5e/v6e).
    divs = [t for t in (512, 256, 128, 64, 32, 16, 8) if n % t == 0]
    if not divs:
        raise ValueError(f"N={n} must be a multiple of 8")
        # TODO(synk): pad + mask rows for N not a multiple of 8.
    for t in divs:                 # descending: largest tile with >= 4 row tiles
        if (2 * n) // t >= 4:
            return t
    return divs[-1]


def _l2norm(x, t, scale):
    n, c = x.shape
    return pl.pallas_call(
        functools.partial(_l2norm_kernel, scale=scale),
        out_shape=jax.ShapeDtypeStruct((n, c), jnp.bfloat16),
        grid_spec=pltpu.PrefetchScalarGridSpec(
            num_scalar_prefetch=0,
            grid=(n // t,),
            in_specs=[pl.BlockSpec((t, c), lambda i: (i, 0))],
            out_specs=pl.BlockSpec((t, c), lambda i: (i, 0))),
        compiler_params=pltpu.CompilerParams(
            dimension_semantics=("parallel",),
            vmem_limit_bytes=_VMEM_LIMIT),
    )(x)


def infonce_dist(embs1, embs2, *, temper=0.1, margin=0.0, tile=None):
    """Returns (loss, top1, top5) like InfoNceDist.forward (single device)."""
    assert embs1.shape == embs2.shape and embs1.ndim == 2
    N, C = embs1.shape
    M = 2 * N
    T = tile if tile is not None else _pick_tile(N)
    assert N % T == 0
    NT = N // T          # label tile offset (in blocks)
    CT = M // T          # number of row/col tiles
    tf = 1.0 / temper

    # ---- kernel 1: per-half L2 normalize with sqrt(tf) folded in (bf16 out) ----
    # TODO(synk): torch.distributed all_gather (world_size > 1) has no
    # single-device equivalent here; this implements the world_size == 1 path.
    scale = math.sqrt(tf)
    e1 = _l2norm(embs1, T, scale)
    e2 = _l2norm(embs2, T, scale)
    embs12n = jnp.concatenate([e1, e2], axis=0)   # (2N, C) bf16, layout only

    # ---- kernel 2: tiled logits + fixed-shift softmax + rank counts ----
    kernel = functools.partial(_infonce_tile_kernel, nt=NT, tf=tf, margin=margin)
    partials = pl.pallas_call(
        kernel,
        out_shape=jax.ShapeDtypeStruct((CT * 8, 128), jnp.float32),
        grid_spec=pltpu.PrefetchScalarGridSpec(
            num_scalar_prefetch=0,
            grid=(CT, CT),
            in_specs=[
                pl.BlockSpec((T, C), lambda ri, cj: (ri, 0)),
                # rotated column order: cj == 0 is the label tile, cj == NT is
                # the self tile, for every row tile ri.
                pl.BlockSpec((T, C), lambda ri, cj: ((ri + NT + cj) % CT, 0)),
            ],
            out_specs=pl.BlockSpec((8, 128), lambda ri, cj: (ri, 0)),
            scratch_shapes=[pltpu.VMEM((T, 1), jnp.float32)] * 3),
        compiler_params=pltpu.CompilerParams(
            dimension_semantics=("parallel", "arbitrary"),
            vmem_limit_bytes=_VMEM_LIMIT),
    )(embs12n, embs12n)

    # tiny final reduction over per-row-tile partials
    loss = jnp.sum(partials[:, 0]) / jnp.float32(M)
    top1 = jnp.sum(partials[:, 1]) * jnp.float32(100.0 / M)
    top5 = jnp.sum(partials[:, 2]) * jnp.float32(100.0 / M)
    return loss, top1, top5


def _reference(embs1, embs2, *, temper=0.1, margin=0.0):
    """Pure-f32 JAX reference matching the PyTorch module (world_size == 1)."""
    def norm(x):
        n = jnp.sqrt(jnp.sum(x * x, axis=1, keepdims=True))
        return x / jnp.maximum(n, 1e-12)
    e = jnp.concatenate([norm(embs1), norm(embs2)], axis=0)
    M = e.shape[0]
    N = M // 2
    logits = e @ e.T
    inds = jnp.arange(M)
    labels = (inds + N) % M
    logits = logits.at[inds, inds].set(-10000.0)
    logits = logits.at[inds, labels].add(-margin)
    logits = logits * (1.0 / temper)
    lse = jax.nn.logsumexp(logits, axis=1)
    lbl = logits[inds, labels]
    loss = jnp.mean(lse - lbl)
    rank = jnp.sum((logits > lbl[:, None]).astype(jnp.int32), axis=1)
    top1 = jnp.mean((rank < 1).astype(jnp.float32)) * 100.0
    top5 = jnp.mean((rank < 5).astype(jnp.float32)) * 100.0
    return loss, top1, top5


if __name__ == "__main__":
    key = jax.random.PRNGKey(0)
    k1, k2, k3 = jax.random.split(key, 3)
    N, C = 64, 128  # 64 pairs of 128-dim embeddings

    # Case A: correlated positives (realistic contrastive setup; ranks robust).
    embs1 = jax.random.normal(k1, (N, C), dtype=jnp.float32)
    embs2 = embs1 + 0.05 * jax.random.normal(k2, (N, C), dtype=jnp.float32)
    for margin in (0.0, 0.2):
        loss, top1, top5 = infonce_dist(embs1, embs2, temper=0.1, margin=margin)
        jax.block_until_ready((loss, top1, top5))
        rl, r1, r5 = _reference(embs1, embs2, temper=0.1, margin=margin)
        assert jnp.allclose(loss, rl, rtol=5e-2, atol=2e-2), (margin, loss, rl)
        assert jnp.allclose(top1, r1, atol=1e-3), (margin, top1, r1)
        assert jnp.allclose(top5, r5, atol=1e-3), (margin, top5, r5)

    # Case B: independent random pairs (non-trivial ranks, loss ~ log(2N-1)).
    embs2b = jax.random.normal(k3, (N, C), dtype=jnp.float32)
    loss, top1, top5 = infonce_dist(embs1, embs2b, temper=0.1, margin=0.0)
    jax.block_until_ready((loss, top1, top5))
    rl, r1, r5 = _reference(embs1, embs2b, temper=0.1, margin=0.0)
    assert jnp.allclose(loss, rl, rtol=2e-2, atol=2e-2), (loss, rl)
    # bf16 MXU path vs f32 reference: allow a few near-tie rank flips (0.78% each)
    assert jnp.allclose(top1, r1, atol=2.5), (top1, r1)
    assert jnp.allclose(top5, r5, atol=2.5), (top5, r5)

    print("KERNEL_OK")
</pallas_src>

<mosaic_0001>
module attributes {stable_mosaic.version = 11 : i64} {
  func.func @_l2norm_kernel(%arg0: i32, %arg1: memref<32x128xf32, #tpu.memory_space<vmem>>, %arg2: memref<32x128xbf16, #tpu.memory_space<vmem>>) attributes {dimension_semantics = [#tpu.dimension_semantics<parallel>], iteration_bounds = array<i64: 2>, scalar_prefetch = 0 : i64, scratch_operands = 0 : i64, tpu.core_type = #tpu.core_type<tc>, window_params = [{transform_indices = @transform_0, window_bounds = array<i64: 32, 128>}, {transform_indices = @transform_1, window_bounds = array<i64: 32, 128>}]} {
    %c0 = arith.constant 0 : index
    %c0_0 = arith.constant 0 : index
    %0 = vector.load %arg1[%c0, %c0_0] : memref<32x128xf32, #tpu.memory_space<vmem>>, vector<32x128xf32>
    %1 = arith.mulf %0, %0 : vector<32x128xf32>
    %cst = arith.constant dense<0.000000e+00> : vector<32xf32>
    %2 = vector.multi_reduction <add>, %1, %cst [1] : vector<32x128xf32> to vector<32xf32>
    %3 = vector.shape_cast %2 : vector<32xf32> to vector<32x1xf32>
    %cst_1 = arith.constant 1.000000e-24 : f32
    %4 = vector.broadcast %cst_1 : f32 to vector<32x1xf32>
    %5 = arith.maximumf %3, %4 : vector<32x1xf32>
    %6 = math.rsqrt %5 : vector<32x1xf32>
    %cst_2 = arith.constant 3.1622777 : f32
    %7 = vector.broadcast %cst_2 : f32 to vector<32x1xf32>
    %8 = arith.mulf %6, %7 : vector<32x1xf32>
    %9 = vector.broadcast %8 : vector<32x1xf32> to vector<32x128xf32>
    %10 = arith.mulf %0, %9 : vector<32x128xf32>
    %11 = arith.truncf %10 : vector<32x128xf32> to vector<32x128xbf16>
    %c0_3 = arith.constant 0 : index
    %c0_4 = arith.constant 0 : index
    %12 = vector.load %arg2[%c0_3, %c0_4] : memref<32x128xbf16, #tpu.memory_space<vmem>>, vector<32x128xbf16>
    tpu.vector_store %arg2[%c0_3, %c0_4], %11 {strides = array<i32>} : memref<32x128xbf16, #tpu.memory_space<vmem>>, vector<32x128xbf16>,
    return
  }
  func.func @transform_0(%arg0: i32) -> (i32, i32) {
    %c0_i32 = arith.constant 0 : i32
    %c0_i32_0 = arith.constant 0 : i32
    return %arg0, %c0_i32 : i32, i32
  }
  func.func @transform_1(%arg0: i32) -> (i32, i32) {
    %c0_i32 = arith.constant 0 : i32
    %c0_i32_0 = arith.constant 0 : i32
    return %arg0, %c0_i32 : i32, i32
  }
}

</mosaic_0001>

<bundles_post_ra>
// kernel: tpu_custom_call.1
= control target key start
LH: loop header
LB: loop body
LE: loop exit
PB: predicated region body
PF: predicated region fallthrough
CT: control target
= control target key end

     0   :  { %6 = vsyncpa [#allocation3], 0  ;;  %s634_s0 = inlined_call_operand.hbm [shape: f32[64,128], index: 0, kind: input, shape index: {}]   ;;  %s635_s1 = inlined_call_operand.hbm [shape: bf16[64,128], index: 1, kind: output, shape index: {}]  }
   0x1   :  { %8 = vsyncpa [#allocation3 + $0x1], 0 }
   0x2   :  { %9 = vsyncpa [#allocation4], 0 }
   0x3   :  { %11 = vsyncpa [#allocation4 + $0x1], 0  ;;  %s479_s6 = smov 0   ;;  %s481_s7 = smov 0  }
   0x4   :  { %s483_s8 = smov 0   ;;  %s485_s9 = smov 0  }
   0x5 LB: > { %s500_s10 = sadd.s32 4294967295, %s461_s9   ;;  %s276_s11 = sadd.s32 4294967294, %s461_s9   ;;  %s461_s9 = sphi %s485_s9, %s650_s9   ;;  %s457_s8 = sphi %s483_s8, %s649_s8   ;;  %s453_s7 = sphi %s481_s7, %s648_s7   ;;  %s449_s6 = sphi %s479_s6, %s647_s6  }
   0x6   : > { %s504_s12 = sadd.s32 1, %s461_s9   ;;  %s24_s13 = sadd.s32 1, %s457_s8 }
   0x7   : > { %s21_s14 = ssub.s32 %s461_s9, %s504_s12  ;;  %p31_p0 = scmp.ne.s32.totalorder %s457_s8, %s453_s7 }
   0x8   : > { %p22_p1 = scmp.eq.s32.totalorder %s21_s14, 0  ;;  %p32_p2 = scmp.eq.s32.totalorder %s461_s9, 0 }
   0x9   : > { %p37_p3 = scmp.ne.s32.totalorder %s453_s7, %s449_s6  ;;  %p38_p4 = scmp.eq.s32.totalorder %s500_s10, 0 }
   0xa   : > { %s516_s15 = scalar_select %p22_p1, %s457_s8, %s24_s13  }
   0xb   : > { %p518_p5 = por %p32_p2, %p31_p0  ;;  %p522_p6 = por %p38_p4, %p37_p3 }
   0xc   : > { %p61_p7 = scmp.eq.s32.totalorder %s500_s10, 1  ;;  %p67_p8 = scmp.eq.s32.totalorder %s276_s11, 1 }
   0xd   : > { %s639_s17 = scalar_select %p522_p6, 1, 0 }
   0xe   : > { %p323_p10 = scmp.lt.s32.totalorder %s461_s9, 2  ;;  %p529_p11 = por %p61_p7, %p31_p0 }
   0xf   : > { %p533_p12 = por %p67_p8, %p37_p3  ;;  %s87_s20 = sand.u32 1, %s457_s8  }
  0x10   : > { %s640_s18 = scalar_select %p529_p11, 1, 0 }
  0x11   : > { %s641_s19 = scalar_select %p533_p12, 1, 0 }
  0x12   : > { %s294_s21 = sshll.u32 %s461_s9, 9  ;;  %s279_s22 = sshll.u32 %s87_s20, 5 }
  0x13   : > { %s542_s25 = scalar_lea.hbm %s634_s0, %s294_s21  ;;  %s91_s26 = scalar_lea.vmem [#allocation2], %s279_s22 }
  0x14   : > { %s98_s27 = sshll.u32 %s91_s26, 4  ;;  %p546_p13 = pnand %p323_p10, %p518_p5  ;;  %s550_s27 = int_to_ptr.vmem [resolvable:$true] %s98_s27 }
  0x15   : > { %s552_s29 = scalar_lea.sflag [#allocation3], %s87_s20  ;;  %s369_s30 = scalar_lea.hbm %s542_s25, 512 }
  0x16   : > { %p370_p0 = scmp.ne.s32.totalorder %s542_s25, %s369_s30  ;;  %p371_p1 = pneg %p546_p13 }
  0x17   : > { %s374_s4 = scalar_lea.hbm %s634_s0, 1024  ;;  %p375_p4 = scmp.lt.s32.totalorder %s542_s25, %s634_s0 }
  0x18   : > { %p372_p2 = pnand %p371_p1, %p370_p0  ;;  %p376_p5 = scmp.lt.s32.totalorder %s374_s4, %s369_s30 }
  0x1a   : > { %p373_p3 = pneg %p372_p2  ;;  %p377_p7 = por %p376_p5, %p375_p4 }
  0x1c   : > { %p378_p8 = pnand %p377_p7, %p373_p3 }
  0x1e   : > { %381 = shalt.err (!%p378_p8)
}
  0x1f   : > { %s382_s13 = scalar_lea.vmem %s550_s27, 512  ;;  %s463_s14 = smov [#allocation2]  }
  0x20   : > { %p383_p10 = scmp.ne.s32.totalorder %s550_s27, %s382_s13  ;;  %s387_s16 = sshll.u32 %s463_s14, 4  ;;  %s388_s16 = int_to_ptr.vmem [resolvable:$false] %s387_s16 }
  0x21   : > { %s389_s20 = scalar_lea.vmem %s388_s16, 1024  ;;  %p390_p2 = scmp.lt.s32.totalorder %s550_s27, %s388_s16 }
  0x22   : > { %p385_p9 = pnand %p383_p10, %p371_p1  ;;  %p391_p12 = scmp.lt.s32.totalorder %s389_s20, %s382_s13 }
  0x24   : > { %p386_p0 = pneg %p385_p9  ;;  %p392_p11 = por %p391_p12, %p390_p2 }
  0x26   : > { %p393_p6 = pnand %p392_p11, %p386_p0 }
  0x28   : > { %396 = shalt.err (!%p393_p6)
}
  0x29   : > { %s464_s21 = smov 128   ;;  %s465_s22 = smov 8  }
  0x2a   : > { %318 = dma.hbm_to_vmem [thread:$0]  (!%p546_p13), %s542_s25, 512, %s550_s27, %s552_s29, %s464_s21, %s464_s21, %s465_s22  }
  0x2b   : > { %p282_p9 = scmp.ge.s32.totalorder %s461_s9, 1  ;;  %p106_p1 = scmp.lt.s32.totalorder %s461_s9, 3 }
  0x2d   : > { %p107_p3 = pnand %p282_p9, %p106_p1 }
  0x2e   : > { %s576_s23 = sand.u32 (!%p107_p3), 1, %s453_s7   ;;  %p643_p6 = scmp.ne.s32.totalorder (!%p107_p3), %s639_s17, 0 }
  0x2f   : > { %110 = sbr.rel (%p107_p3) target bundleno = 235 (0xeb), region = 24  ;;  %s283_s24 = sshll.u32 (!%p107_p3), %s576_s23, 5 }
  0x30   : > { %s113_s26 = scalar_lea.sflag (!%p107_p3), [#allocation3], %s576_s23  ;;  %s116_s30 = scalar_lea.vmem (!%p107_p3), [#allocation2], %s283_s24 }
  0x34   : > { %440 = dma.done.wait (%p643_p6), %s113_s26, 512  }
  0x35   : > { %442 = vsyncadd (%p643_p6), %s113_s26, 4294966784  ;;  %v139_v0 = vld [vmem:[%s116_s30 + $0x10] sm:$0xff]  ;;  %v137_v1 = vld [vmem:[%s116_s30] sm:$0xff]  ;;  %s284_s17 = sshll.u32 %s576_s23, 4  ;;  %s299_s25 = sshll.u32 %s500_s10, 8 }
  0x36   : > { %v140_v2 = vld [vmem:[%s116_s30 + $0x18] sm:$0xff]  ;;  %v143_v3 = vmul.f32 %v139_v0, %v139_v0  ;;  %v141_v4 = vmul.f32 %v137_v1, %v137_v1  ;;  %v138_v5 = vld [vmem:[%s116_s30 + $0x8] sm:$0xff]  ;;  %s134_s27 = scalar_lea.vmem [#allocation5], %s284_s17  ;;  %s589_s3 = scalar_lea.hbm %s635_s1, %s299_s25 }
  0x37   : > { %v144_v6 = vmul.f32 %v140_v2, %v140_v2  ;;  %v142_v7 = vmul.f32 %v138_v5, %v138_v5  ;;  %s203_s28 = sshll.u32 %s134_s27, 4  ;;  %s190_s10 = scalar_lea.sflag [#allocation4], %s576_s23  ;;  %s591_s28 = int_to_ptr.vmem [resolvable:$true] %s203_s28 }
  0x38   : > { %149 = vadd.xlane.f32.xlu1 %v143_v3  ;;  %145 = vadd.xlane.f32.xlu0 %v141_v4  ;;  %s397_s4 = scalar_lea.vmem %s591_s28, 256  ;;  %p644_p12 = scmp.ne.s32.totalorder %s640_s18, 0 }
  0x39   : > { %p398_p11 = scmp.ne.s32.totalorder %s591_s28, %s397_s4  ;;  %s466_s5 = smov [#allocation5]  }
  0x3a   : > { %s401_s11 = sshll.u32 %s466_s5, 4  ;;  %s402_s11 = int_to_ptr.vmem [resolvable:$false] %s401_s11 }
  0x3b   : > { %p399_p13 = pnand %p398_p11, %p644_p12  ;;  %s403_s13 = scalar_lea.vmem %s402_s11, 512 }
  0x3c   : > { %151 = vadd.xlane.f32.xlu1 %v144_v6  ;;  %147 = vadd.xlane.f32.xlu0 %v142_v7  ;;  %p404_p5 = scmp.lt.s32.totalorder %s591_s28, %s402_s11  ;;  %p405_p7 = scmp.lt.s32.totalorder %s403_s13, %s397_s4 }
  0x3d   : > { %p400_p4 = pneg %p399_p13 }
  0x3e   : > { %p406_p8 = por %p405_p7, %p404_p5 }
  0x40   : > { %p407_p10 = pnand %p406_p8, %p400_p4 }
  0xc1   : > { %v150_v8 = vpop.xlane.xlu1 %149  ;;  %v146_v9 = vpop.xlane.xlu0 %145 }
  0xc2   : > { %v155_v10 = vmax.f32 %v150_v8, 1e-24  ;;  %v153_v11 = vmax.f32 %v146_v9, 1e-24 }
  0xc4   : > { %361 = vrsqrt.f32 %v155_v10 }
  0xc5   : > { %363 = vrsqrt.f32 %v153_v11  ;;  %v152_v12 = vpop.xlane.xlu1 %151  ;;  %v148_v13 = vpop.xlane.xlu0 %147 }
  0xc6   : > { %v156_v14 = vmax.f32 %v152_v12, 1e-24  ;;  %v154_v15 = vmax.f32 %v148_v13, 1e-24 }
  0xc8   : > { %365 = vrsqrt.f32 %v156_v14 }
  0xc9   : > { %367 = vrsqrt.f32 %v154_v15 }
  0xd1   : > { %v362_v16 = vpop.eup %361 }
  0xd2   : > { %v364_v17 = vpop.eup %363  ;;  %v163_v18 = vmul.f32 3.1622777, %v362_v16 }
  0xd3   : > { %v161_v20 = vmul.f32 3.1622777, %v364_v17 }
  0xd4   : > { %v167_v24 = vmul.f32 %v163_v18, %v139_v0 }
  0xd5   : > { %v366_v19 = vpop.eup %365  ;;  %v165_v26 = vmul.f32 %v161_v20, %v137_v1 }
  0xd6   : > { %v368_v21 = vpop.eup %367  ;;  %v164_v22 = vmul.f32 3.1622777, %v366_v19 }
  0xd7   : > { %v162_v23 = vmul.f32 3.1622777, %v368_v21 }
  0xd8   : > { %v168_v25 = vmul.f32 %v164_v22, %v140_v2 }
  0xd9   : > { %v166_v27 = vmul.f32 %v162_v23, %v138_v5 }
  0xda   : > { %v308_v28 = vpack.c.bf16 %v168_v25, %v167_v24 }
  0xdb   : > { %v303_v29 = vpack.c.bf16 %v166_v27, %v165_v26 }
  0xdc   : > { %310 = vst [vmem:[%s134_s27 + $0x8] sm:$0xff] %v308_v28  }
  0xdd   : > { %304 = vst [vmem:[%s134_s27] sm:$0xff] %v303_v29  }
  0xde   : > { %410 = shalt.err (!%p407_p10)
}
  0xdf   : > { %s411_s14 = scalar_lea.hbm %s589_s3, 256  ;;  %s415_s21 = scalar_lea.hbm %s635_s1, 512 }
  0xe0   : > { %p412_p0 = scmp.ne.s32.totalorder %s589_s3, %s411_s14  ;;  %p416_p1 = scmp.lt.s32.totalorder %s589_s3, %s635_s1 }
  0xe1   : > { %p417_p3 = scmp.lt.s32.totalorder %s415_s21, %s411_s14 }
  0xe2   : > { %p413_p2 = pnand %p412_p0, %p644_p12 }
  0xe3   : > { %p418_p6 = por %p417_p3, %p416_p1 }
  0xe4   : > { %p414_p9 = pneg %p413_p2 }
  0xe6   : > { %p419_p11 = pnand %p418_p6, %p414_p9 }
  0xe8   : > { %422 = shalt.err (!%p419_p11)
}
  0xe9   : > { %s467_s26 = smov 64   ;;  %s468_s30 = smov 4  }
  0xea   : > { %313 = dma.vmem_to_hbm [thread:$0]  (%p644_p12), %s591_s28, 256, %s589_s3, %s190_s10, %s467_s26, %s467_s26, %s468_s30  }
  0xeb PF: > { %s218_s17 = sand.u32 1, %s449_s6   ;;  %p645_p13 = scmp.ne.s32.totalorder %s641_s19, 0 }
  0xec   : > { %p646_p4 = scmp.ge.s32.totalorder %s461_s9, 2  ;;  %s219_s25 = scalar_lea.sflag [#allocation4], %s218_s17 }
  0xee   : > { %p320_p5 = pnand %p646_p4, %p645_p13 }
  0xf0   : > { %p321_p7 = pneg %p320_p5 }
  0xf2   : > { %444 = dma.done.wait (%p321_p7), %s219_s25, 256  }
  0xf3   : > { %446 = vsyncadd (%p321_p7), %s219_s25, 4294967040  ;;  %p14_p8 = scmp.ge.s32.totalorder %s504_s12, 4   ;;  %s647_s6 = smov %s453_s7 }
  0xf4   : > { %s648_s7 = smov %s457_s8  ;;  %s649_s8 = smov %s516_s15 }
  0xf5   : > { %s650_s9 = smov %s504_s12  ;;  %16 = sbr.rel (!%p14_p8) target bundleno = 5 (0x5), region = 69 }
  0xfa   :  { %224 = vsyncpa [#allocation3], 1 }
  0xfb   :  { %226 = vsyncpa [#allocation3 + $0x1], 1 }
  0xfc   :  { %227 = vsyncpa [#allocation4], 1 }
  0xfd   :  { %229 = vsyncpa [#allocation4 + $0x1], 1 }

</bundles_post_ra>
